<compile_context>
chip_gen: v7x
topology: tpu7x:2x2x1
jax: 0.10.0
libtpu: 0.0.40
codegen_flags: <defaults>
</compile_context>

<pallas_src>
import jax
import jax.numpy as jnp
from jax.experimental import pallas as pl
from jax.experimental.pallas import tpu as pltpu


def _round_up(n, m):
    return ((n + m - 1) // m) * m


def _rnn_kernel(x_ref, wih_ref, whh_ref, b_ref, who_ref, bho_ref,
                hs_ref, ys_ref):
    """Whole-sequence Elman RNN, time-major, all operands VMEM-resident.

    x_ref  : (T, Bp, I)    time-major input (batch padded to 8 sublanes)
    wih_ref: (I, Hp)       W_ih^T, zero-padded to 128-lane multiple
    whh_ref: (Hp, Hp)      W_hh^T, zero-padded
    b_ref  : (1, Hp)       b_ih + b_hh (pre-fused), zero-padded
    who_ref: (Hp, Op)      W_ho^T, zero-padded
    bho_ref: (1, Op)       b_ho, zero-padded
    hs_ref : (T, Bp, Hp)   hidden states (time-major)
    ys_ref : (T, Bp, Op)   outputs (time-major)
    """
    T, Bp, I = x_ref.shape
    Hp = whh_ref.shape[0]
    Op = who_ref.shape[1]

    wih = wih_ref[...]
    whh = whh_ref[...]

    # --- Hoisted input projection (off the serial path): one
    # (T*Bp, I) @ (I, Hp) matmul for all timesteps, bias added once.
    xw = jnp.dot(x_ref[...].reshape(T * Bp, I), wih,
                 preferred_element_type=jnp.float32) + b_ref[...]
    xw = xw.reshape(T, Bp, Hp)                       # leading-dim merge/split: layout no-op

    # --- Serial recurrence: per step only h @ W_hh^T + xw[t].
    # Leading-axis slice of a time-major value is free; per-step store to
    # hs_ref bounds live ranges to O(1) values.  T is small & static -> full
    # unroll so the LLO scheduler sees across timesteps.
    # TODO(synk): for long T, switch to lax.fori_loop over ~8-16-step chunks
    # (unroll=True inside a chunk) to bound code size / vreg pressure.
    h = jnp.zeros((Bp, Hp), jnp.float32)             # PyTorch h_0=None -> zeros
    for t in range(T):
        h = jnp.maximum(
            xw[t] + jnp.dot(h, whh, preferred_element_type=jnp.float32),
            0.0)
        hs_ref[t] = h                                # contiguous unmasked store

    # --- Output projection hoisted out of the loop: ONE (T*Bp, Hp) @ (Hp, Op)
    # matmul + ReLU, producing ys already stacked (no per-step dots, no stack).
    hs_flat = hs_ref[...].reshape(T * Bp, Hp)
    y = jnp.maximum(
        jnp.dot(hs_flat, who_ref[...], preferred_element_type=jnp.float32)
        + bho_ref[...],
        0.0)
    ys_ref[...] = y.reshape(T, Bp, Op)


@jax.jit
def rnn_forward(x, w_ih, w_hh, b_ih, b_hh, w_ho, b_ho):
    """x: (B, T, I) f32 -> (hs (B, T, H), ys (B, T, O)), PyTorch-compatible."""
    B, T, I = x.shape
    H = w_ih.shape[0]
    O = w_ho.shape[0]

    Bp = _round_up(B, 8)          # full sublane groups for per-step stores
    Hp = _round_up(H, 128)        # lane-dense hidden dim
    Op = _round_up(O, 128)        # lane-dense output dim

    # Time-major + batch pad (padded batch rows compute garbage-free values
    # that are sliced off below; they never contaminate real rows).
    x_tm = jnp.transpose(x, (1, 0, 2))                       # (T, B, I)
    if Bp != B:
        x_tm = jnp.pad(x_tm, ((0, 0), (0, Bp - B), (0, 0)))  # (T, Bp, I)

    # One-off parameter reshuffles: transpose + zero-pad to lane-dense shapes.
    # Exact: padded rows/cols are zero, so padded lanes stay 0 through ReLU.
    wih_t = jnp.zeros((I, Hp), jnp.float32).at[:, :H].set(w_ih.T)
    whh_t = jnp.zeros((Hp, Hp), jnp.float32).at[:H, :H].set(w_hh.T)
    who_t = jnp.zeros((Hp, Op), jnp.float32).at[:H, :O].set(w_ho.T)
    b     = jnp.zeros((1, Hp), jnp.float32).at[0, :H].set(b_ih + b_hh)
    bho   = jnp.zeros((1, Op), jnp.float32).at[0, :O].set(b_ho)

    vmem = pl.BlockSpec(memory_space=pltpu.MemorySpace.VMEM)
    hs_p, ys_p = pl.pallas_call(
        _rnn_kernel,
        out_shape=(jax.ShapeDtypeStruct((T, Bp, Hp), jnp.float32),
                   jax.ShapeDtypeStruct((T, Bp, Op), jnp.float32)),
        in_specs=[vmem] * 6,
        out_specs=(vmem, vmem),
    )(x_tm, wih_t, whh_t, b, who_t, bho)

    # Back to PyTorch batch-first layout, padding sliced off (cheap plumbing).
    hs = jnp.transpose(hs_p[:, :B, :H], (1, 0, 2))
    ys = jnp.transpose(ys_p[:, :B, :O], (1, 0, 2))
    return hs, ys


def _reference_forward(x, w_ih, w_hh, b_ih, b_hh, w_ho, b_ho):
    """Pure-JAX mirror of the PyTorch loop (h_0=None -> zeros)."""
    B, T, _ = x.shape
    h = jnp.zeros((B, w_ih.shape[0]), jnp.float32)
    hs, ys = [], []
    for t in range(T):
        h = jnp.maximum(x[:, t] @ w_ih.T + b_ih + h @ w_hh.T + b_hh, 0.0)
        y = jnp.maximum(h @ w_ho.T + b_ho, 0.0)
        hs.append(h)
        ys.append(y)
    return jnp.stack(hs, axis=1), jnp.stack(ys, axis=1)


if __name__ == "__main__":
    B, T = 2, 8
    in_size, hidden_size, out_size = 16, 32, 8

    key = jax.random.PRNGKey(0)
    ks = jax.random.split(key, 7)
    bound = 1.0 / jnp.sqrt(hidden_size)

    # Deterministic parameter init (shapes match nn.RNNCell / nn.Linear).
    w_ih = jax.random.uniform(ks[0], (hidden_size, in_size), jnp.float32, -bound, bound)
    w_hh = jax.random.uniform(ks[1], (hidden_size, hidden_size), jnp.float32, -bound, bound)
    b_ih = jax.random.uniform(ks[2], (hidden_size,), jnp.float32, -bound, bound)
    b_hh = jax.random.uniform(ks[3], (hidden_size,), jnp.float32, -bound, bound)
    w_ho = jax.random.uniform(ks[4], (out_size, hidden_size), jnp.float32, -bound, bound)
    b_ho = jax.random.uniform(ks[5], (out_size,), jnp.float32, -bound, bound)

    x = jax.random.normal(ks[6], (B, T, in_size), jnp.float32)

    hs, ys = rnn_forward(x, w_ih, w_hh, b_ih, b_hh, w_ho, b_ho)
    jax.block_until_ready((hs, ys))

    hs_ref, ys_ref = _reference_forward(x, w_ih, w_hh, b_ih, b_hh, w_ho, b_ho)
    assert hs.shape == (B, T, hidden_size) and ys.shape == (B, T, out_size)
    assert jnp.allclose(hs, hs_ref, atol=1e-5, rtol=1e-5)
    assert jnp.allclose(ys, ys_ref, atol=1e-5, rtol=1e-5)

    print("KERNEL_OK")
</pallas_src>

<mosaic_0001>
module attributes {stable_mosaic.version = 11 : i64} {
  func.func @_rnn_kernel(%arg0: memref<8x8x16xf32, #tpu.memory_space<vmem>>, %arg1: memref<16x128xf32, #tpu.memory_space<vmem>>, %arg2: memref<128x128xf32, #tpu.memory_space<vmem>>, %arg3: memref<1x128xf32, #tpu.memory_space<vmem>>, %arg4: memref<128x128xf32, #tpu.memory_space<vmem>>, %arg5: memref<1x128xf32, #tpu.memory_space<vmem>>, %arg6: memref<8x8x128xf32, #tpu.memory_space<vmem>>, %arg7: memref<8x8x128xf32, #tpu.memory_space<vmem>>) attributes {dimension_semantics = [], scalar_prefetch = 0 : i64, scratch_operands = 0 : i64, tpu.core_type = #tpu.core_type<tc>} {
    %c0 = arith.constant 0 : index
    %c0_0 = arith.constant 0 : index
    %0 = vector.load %arg1[%c0, %c0_0] : memref<16x128xf32, #tpu.memory_space<vmem>>, vector<16x128xf32>
    %c0_1 = arith.constant 0 : index
    %c0_2 = arith.constant 0 : index
    %1 = vector.load %arg2[%c0_1, %c0_2] : memref<128x128xf32, #tpu.memory_space<vmem>>, vector<128x128xf32>
    %c0_3 = arith.constant 0 : index
    %c0_4 = arith.constant 0 : index
    %c0_5 = arith.constant 0 : index
    %2 = vector.load %arg0[%c0_3, %c0_4, %c0_5] : memref<8x8x16xf32, #tpu.memory_space<vmem>>, vector<8x8x16xf32>
    %3 = vector.shape_cast %2 : vector<8x8x16xf32> to vector<64x16xf32>
    %cst = arith.constant dense<0.000000e+00> : vector<64x128xf32>
    %4 = tpu.matmul %3, %0, %cst {dimension_numbers = #tpu.dot_dimension_numbers<[1], [0], [0], [1], [0, 0, 1, 1], [], []>} : vector<64x16xf32>, vector<16x128xf32>, vector<64x128xf32> -> vector<64x128xf32>
    %c0_6 = arith.constant 0 : index
    %c0_7 = arith.constant 0 : index
    %5 = vector.load %arg3[%c0_6, %c0_7] : memref<1x128xf32, #tpu.memory_space<vmem>>, vector<1x128xf32>
    %6 = vector.broadcast %5 : vector<1x128xf32> to vector<64x128xf32>
    %7 = arith.addf %4, %6 : vector<64x128xf32>
    %8 = vector.shape_cast %7 : vector<64x128xf32> to vector<8x8x128xf32>
    %cst_8 = arith.constant 0.000000e+00 : f32
    %9 = vector.broadcast %cst_8 : f32 to vector<8x128xf32>
    %10 = vector.extract_strided_slice %8 {offsets = [0, 0, 0], sizes = [1, 8, 128], strides = [1, 1, 1]} : vector<8x8x128xf32> to vector<1x8x128xf32>
    %11 = vector.shape_cast %10 : vector<1x8x128xf32> to vector<8x128xf32>
    %cst_9 = arith.constant dense<0.000000e+00> : vector<8x128xf32>
    %12 = tpu.matmul %9, %1, %cst_9 {dimension_numbers = #tpu.dot_dimension_numbers<[1], [0], [0], [1], [0, 0, 1, 1], [], []>} : vector<8x128xf32>, vector<128x128xf32>, vector<8x128xf32> -> vector<8x128xf32>
    %13 = arith.addf %11, %12 : vector<8x128xf32>
    %cst_10 = arith.constant 0.000000e+00 : f32
    %14 = vector.broadcast %cst_10 : f32 to vector<8x128xf32>
    %15 = arith.maximumf %13, %14 : vector<8x128xf32>
    %c0_11 = arith.constant 0 : index
    %c0_12 = arith.constant 0 : index
    %c0_13 = arith.constant 0 : index
    %16 = vector.load %arg6[%c0_11, %c0_12, %c0_13] : memref<8x8x128xf32, #tpu.memory_space<vmem>>, vector<1x8x128xf32>
    %17 = vector.shape_cast %16 : vector<1x8x128xf32> to vector<8x128xf32>
    %18 = vector.shape_cast %15 : vector<8x128xf32> to vector<1x8x128xf32>
    tpu.vector_store %arg6[%c0_11, %c0_12, %c0_13], %18 {strides = array<i32>} : memref<8x8x128xf32, #tpu.memory_space<vmem>>, vector<1x8x128xf32>,
    %19 = vector.extract_strided_slice %8 {offsets = [1, 0, 0], sizes = [1, 8, 128], strides = [1, 1, 1]} : vector<8x8x128xf32> to vector<1x8x128xf32>
    %20 = vector.shape_cast %19 : vector<1x8x128xf32> to vector<8x128xf32>
    %cst_14 = arith.constant dense<0.000000e+00> : vector<8x128xf32>
    %21 = tpu.matmul %15, %1, %cst_14 {dimension_numbers = #tpu.dot_dimension_numbers<[1], [0], [0], [1], [0, 0, 1, 1], [], []>} : vector<8x128xf32>, vector<128x128xf32>, vector<8x128xf32> -> vector<8x128xf32>
    %22 = arith.addf %20, %21 : vector<8x128xf32>
    %cst_15 = arith.constant 0.000000e+00 : f32
    %23 = vector.broadcast %cst_15 : f32 to vector<8x128xf32>
    %24 = arith.maximumf %22, %23 : vector<8x128xf32>
    %c1 = arith.constant 1 : index
    %c0_16 = arith.constant 0 : index
    %c0_17 = arith.constant 0 : index
    %25 = vector.load %arg6[%c1, %c0_16, %c0_17] : memref<8x8x128xf32, #tpu.memory_space<vmem>>, vector<1x8x128xf32>
    %26 = vector.shape_cast %25 : vector<1x8x128xf32> to vector<8x128xf32>
    %27 = vector.shape_cast %24 : vector<8x128xf32> to vector<1x8x128xf32>
    tpu.vector_store %arg6[%c1, %c0_16, %c0_17], %27 {strides = array<i32>} : memref<8x8x128xf32, #tpu.memory_space<vmem>>, vector<1x8x128xf32>,
    %28 = vector.extract_strided_slice %8 {offsets = [2, 0, 0], sizes = [1, 8, 128], strides = [1, 1, 1]} : vector<8x8x128xf32> to vector<1x8x128xf32>
    %29 = vector.shape_cast %28 : vector<1x8x128xf32> to vector<8x128xf32>
    %cst_18 = arith.constant dense<0.000000e+00> : vector<8x128xf32>
    %30 = tpu.matmul %24, %1, %cst_18 {dimension_numbers = #tpu.dot_dimension_numbers<[1], [0], [0], [1], [0, 0, 1, 1], [], []>} : vector<8x128xf32>, vector<128x128xf32>, vector<8x128xf32> -> vector<8x128xf32>
    %31 = arith.addf %29, %30 : vector<8x128xf32>
    %cst_19 = arith.constant 0.000000e+00 : f32
    %32 = vector.broadcast %cst_19 : f32 to vector<8x128xf32>
    %33 = arith.maximumf %31, %32 : vector<8x128xf32>
    %c2 = arith.constant 2 : index
    %c0_20 = arith.constant 0 : index
    %c0_21 = arith.constant 0 : index
    %34 = vector.load %arg6[%c2, %c0_20, %c0_21] : memref<8x8x128xf32, #tpu.memory_space<vmem>>, vector<1x8x128xf32>
    %35 = vector.shape_cast %34 : vector<1x8x128xf32> to vector<8x128xf32>
    %36 = vector.shape_cast %33 : vector<8x128xf32> to vector<1x8x128xf32>
    tpu.vector_store %arg6[%c2, %c0_20, %c0_21], %36 {strides = array<i32>} : memref<8x8x128xf32, #tpu.memory_space<vmem>>, vector<1x8x128xf32>,
    %37 = vector.extract_strided_slice %8 {offsets = [3, 0, 0], sizes = [1, 8, 128], strides = [1, 1, 1]} : vector<8x8x128xf32> to vector<1x8x128xf32>
    %38 = vector.shape_cast %37 : vector<1x8x128xf32> to vector<8x128xf32>
    %cst_22 = arith.constant dense<0.000000e+00> : vector<8x128xf32>
    %39 = tpu.matmul %33, %1, %cst_22 {dimension_numbers = #tpu.dot_dimension_numbers<[1], [0], [0], [1], [0, 0, 1, 1], [], []>} : vector<8x128xf32>, vector<128x128xf32>, vector<8x128xf32> -> vector<8x128xf32>
    %40 = arith.addf %38, %39 : vector<8x128xf32>
    %cst_23 = arith.constant 0.000000e+00 : f32
    %41 = vector.broadcast %cst_23 : f32 to vector<8x128xf32>
    %42 = arith.maximumf %40, %41 : vector<8x128xf32>
    %c3 = arith.constant 3 : index
    %c0_24 = arith.constant 0 : index
    %c0_25 = arith.constant 0 : index
    %43 = vector.load %arg6[%c3, %c0_24, %c0_25] : memref<8x8x128xf32, #tpu.memory_space<vmem>>, vector<1x8x128xf32>
    %44 = vector.shape_cast %43 : vector<1x8x128xf32> to vector<8x128xf32>
    %45 = vector.shape_cast %42 : vector<8x128xf32> to vector<1x8x128xf32>
    tpu.vector_store %arg6[%c3, %c0_24, %c0_25], %45 {strides = array<i32>} : memref<8x8x128xf32, #tpu.memory_space<vmem>>, vector<1x8x128xf32>,
    %46 = vector.extract_strided_slice %8 {offsets = [4, 0, 0], sizes = [1, 8, 128], strides = [1, 1, 1]} : vector<8x8x128xf32> to vector<1x8x128xf32>
    %47 = vector.shape_cast %46 : vector<1x8x128xf32> to vector<8x128xf32>
    %cst_26 = arith.constant dense<0.000000e+00> : vector<8x128xf32>
    %48 = tpu.matmul %42, %1, %cst_26 {dimension_numbers = #tpu.dot_dimension_numbers<[1], [0], [0], [1], [0, 0, 1, 1], [], []>} : vector<8x128xf32>, vector<128x128xf32>, vector<8x128xf32> -> vector<8x128xf32>
    %49 = arith.addf %47, %48 : vector<8x128xf32>
    %cst_27 = arith.constant 0.000000e+00 : f32
    %50 = vector.broadcast %cst_27 : f32 to vector<8x128xf32>
    %51 = arith.maximumf %49, %50 : vector<8x128xf32>
    %c4 = arith.constant 4 : index
    %c0_28 = arith.constant 0 : index
    %c0_29 = arith.constant 0 : index
    %52 = vector.load %arg6[%c4, %c0_28, %c0_29] : memref<8x8x128xf32, #tpu.memory_space<vmem>>, vector<1x8x128xf32>
    %53 = vector.shape_cast %52 : vector<1x8x128xf32> to vector<8x128xf32>
    %54 = vector.shape_cast %51 : vector<8x128xf32> to vector<1x8x128xf32>
    tpu.vector_store %arg6[%c4, %c0_28, %c0_29], %54 {strides = array<i32>} : memref<8x8x128xf32, #tpu.memory_space<vmem>>, vector<1x8x128xf32>,
    %55 = vector.extract_strided_slice %8 {offsets = [5, 0, 0], sizes = [1, 8, 128], strides = [1, 1, 1]} : vector<8x8x128xf32> to vector<1x8x128xf32>
    %56 = vector.shape_cast %55 : vector<1x8x128xf32> to vector<8x128xf32>
    %cst_30 = arith.constant dense<0.000000e+00> : vector<8x128xf32>
    %57 = tpu.matmul %51, %1, %cst_30 {dimension_numbers = #tpu.dot_dimension_numbers<[1], [0], [0], [1], [0, 0, 1, 1], [], []>} : vector<8x128xf32>, vector<128x128xf32>, vector<8x128xf32> -> vector<8x128xf32>
    %58 = arith.addf %56, %57 : vector<8x128xf32>
    %cst_31 = arith.constant 0.000000e+00 : f32
    %59 = vector.broadcast %cst_31 : f32 to vector<8x128xf32>
    %60 = arith.maximumf %58, %59 : vector<8x128xf32>
    %c5 = arith.constant 5 : index
    %c0_32 = arith.constant 0 : index
    %c0_33 = arith.constant 0 : index
    %61 = vector.load %arg6[%c5, %c0_32, %c0_33] : memref<8x8x128xf32, #tpu.memory_space<vmem>>, vector<1x8x128xf32>
    %62 = vector.shape_cast %61 : vector<1x8x128xf32> to vector<8x128xf32>
    %63 = vector.shape_cast %60 : vector<8x128xf32> to vector<1x8x128xf32>
    tpu.vector_store %arg6[%c5, %c0_32, %c0_33], %63 {strides = array<i32>} : memref<8x8x128xf32, #tpu.memory_space<vmem>>, vector<1x8x128xf32>,
    %64 = vector.extract_strided_slice %8 {offsets = [6, 0, 0], sizes = [1, 8, 128], strides = [1, 1, 1]} : vector<8x8x128xf32> to vector<1x8x128xf32>
    %65 = vector.shape_cast %64 : vector<1x8x128xf32> to vector<8x128xf32>
    %cst_34 = arith.constant dense<0.000000e+00> : vector<8x128xf32>
    %66 = tpu.matmul %60, %1, %cst_34 {dimension_numbers = #tpu.dot_dimension_numbers<[1], [0], [0], [1], [0, 0, 1, 1], [], []>} : vector<8x128xf32>, vector<128x128xf32>, vector<8x128xf32> -> vector<8x128xf32>
    %67 = arith.addf %65, %66 : vector<8x128xf32>
    %cst_35 = arith.constant 0.000000e+00 : f32
    %68 = vector.broadcast %cst_35 : f32 to vector<8x128xf32>
    %69 = arith.maximumf %67, %68 : vector<8x128xf32>
    %c6 = arith.constant 6 : index
    %c0_36 = arith.constant 0 : index
    %c0_37 = arith.constant 0 : index
    %70 = vector.load %arg6[%c6, %c0_36, %c0_37] : memref<8x8x128xf32, #tpu.memory_space<vmem>>, vector<1x8x128xf32>
    %71 = vector.shape_cast %70 : vector<1x8x128xf32> to vector<8x128xf32>
    %72 = vector.shape_cast %69 : vector<8x128xf32> to vector<1x8x128xf32>
    tpu.vector_store %arg6[%c6, %c0_36, %c0_37], %72 {strides = array<i32>} : memref<8x8x128xf32, #tpu.memory_space<vmem>>, vector<1x8x128xf32>,
    %73 = vector.extract_strided_slice %8 {offsets = [7, 0, 0], sizes = [1, 8, 128], strides = [1, 1, 1]} : vector<8x8x128xf32> to vector<1x8x128xf32>
    %74 = vector.shape_cast %73 : vector<1x8x128xf32> to vector<8x128xf32>
    %cst_38 = arith.constant dense<0.000000e+00> : vector<8x128xf32>
    %75 = tpu.matmul %69, %1, %cst_38 {dimension_numbers = #tpu.dot_dimension_numbers<[1], [0], [0], [1], [0, 0, 1, 1], [], []>} : vector<8x128xf32>, vector<128x128xf32>, vector<8x128xf32> -> vector<8x128xf32>
    %76 = arith.addf %74, %75 : vector<8x128xf32>
    %cst_39 = arith.constant 0.000000e+00 : f32
    %77 = vector.broadcast %cst_39 : f32 to vector<8x128xf32>
    %78 = arith.maximumf %76, %77 : vector<8x128xf32>
    %c7 = arith.constant 7 : index
    %c0_40 = arith.constant 0 : index
    %c0_41 = arith.constant 0 : index
    %79 = vector.load %arg6[%c7, %c0_40, %c0_41] : memref<8x8x128xf32, #tpu.memory_space<vmem>>, vector<1x8x128xf32>
    %80 = vector.shape_cast %79 : vector<1x8x128xf32> to vector<8x128xf32>
    %81 = vector.shape_cast %78 : vector<8x128xf32> to vector<1x8x128xf32>
    tpu.vector_store %arg6[%c7, %c0_40, %c0_41], %81 {strides = array<i32>} : memref<8x8x128xf32, #tpu.memory_space<vmem>>, vector<1x8x128xf32>,
    %c0_42 = arith.constant 0 : index
    %c0_43 = arith.constant 0 : index
    %c0_44 = arith.constant 0 : index
    %82 = vector.load %arg6[%c0_42, %c0_43, %c0_44] : memref<8x8x128xf32, #tpu.memory_space<vmem>>, vector<8x8x128xf32>
    %83 = vector.shape_cast %82 : vector<8x8x128xf32> to vector<64x128xf32>
    %c0_45 = arith.constant 0 : index
    %c0_46 = arith.constant 0 : index
    %84 = vector.load %arg4[%c0_45, %c0_46] : memref<128x128xf32, #tpu.memory_space<vmem>>, vector<128x128xf32>
    %cst_47 = arith.constant dense<0.000000e+00> : vector<64x128xf32>
    %85 = tpu.matmul %83, %84, %cst_47 {dimension_numbers = #tpu.dot_dimension_numbers<[1], [0], [0], [1], [0, 0, 1, 1], [], []>} : vector<64x128xf32>, vector<128x128xf32>, vector<64x128xf32> -> vector<64x128xf32>
    %c0_48 = arith.constant 0 : index
    %c0_49 = arith.constant 0 : index
    %86 = vector.load %arg5[%c0_48, %c0_49] : memref<1x128xf32, #tpu.memory_space<vmem>>, vector<1x128xf32>
    %87 = vector.broadcast %86 : vector<1x128xf32> to vector<64x128xf32>
    %88 = arith.addf %85, %87 : vector<64x128xf32>
    %cst_50 = arith.constant 0.000000e+00 : f32
    %89 = vector.broadcast %cst_50 : f32 to vector<64x128xf32>
    %90 = arith.maximumf %88, %89 : vector<64x128xf32>
    %91 = vector.shape_cast %90 : vector<64x128xf32> to vector<8x8x128xf32>
    %c0_51 = arith.constant 0 : index
    %c0_52 = arith.constant 0 : index
    %c0_53 = arith.constant 0 : index
    %92 = vector.load %arg7[%c0_51, %c0_52, %c0_53] : memref<8x8x128xf32, #tpu.memory_space<vmem>>, vector<8x8x128xf32>
    tpu.vector_store %arg7[%c0_51, %c0_52, %c0_53], %91 {strides = array<i32>} : memref<8x8x128xf32, #tpu.memory_space<vmem>>, vector<8x8x128xf32>,
    return
  }
}

</mosaic_0001>

<bundles_post_ra>
// kernel: rnn_forward.1
= control target key start
LH: loop header
LB: loop body
LE: loop exit
PB: predicated region body
PF: predicated region fallthrough
CT: control target
= control target key end

     0   :  { %v1697_v0 = vmov 0.0|0.0   ;;  %vm1698_vm0 = vmmov 0   ;;  %v1699_v4 = vmov 0.0   ;;  %vm58_vm1 = vcmask 130048   ;;  %s2136_s2 = inlined_call_operand.vmem [shape: f32[128,128], index: 2, kind: input, shape index: {}]   ;;  %s2137_s1 = inlined_call_operand.vmem [shape: f32[16,128], index: 1, kind: input, shape index: {}]   ;;  %s2138_s0 = inlined_call_operand.vmem [shape: f32[8,8,16], index: 0, kind: input, shape index: {}]   ;;  %s2139_s3 = inlined_call_operand.vmem [shape: f32[1,128], index: 3, kind: input, shape index: {}]   ;;  %s2140_s6 = inlined_call_operand.vmem [shape: f32[8,8,128], index: 6, kind: output, shape index: {0}]   ;;  %s2141_s4 = inlined_call_operand.vmem [shape: f32[128,128], index: 4, kind: input, shape index: {}]   ;;  %s2142_s5 = inlined_call_operand.vmem [shape: f32[1,128], index: 5, kind: input, shape index: {}]   ;;  %s2143_s7 = inlined_call_operand.vmem [shape: f32[8,8,128], index: 7, kind: output, shape index: {1}]  }
   0x1   :  { %1470 = vmatprep.subr.bf16.mxu0 %v1697_v0  ;;  %v27_v1 = vld [vmem:[%s2136_s2] sm:$0xff]  ;;  %v28_v2 = vld [vmem:[%s2136_s2 + $0x8] sm:$0xff]  ;;  %v29_v3 = vld [vmem:[%s2136_s2 + $0x10] sm:$0xff]  ;;  %1174 = vmatprep.mubr.msk.f32.mxu0 %vm1698_vm0, %v1699_v4 }
   0x2   :  { %v1752_v5 = vpack.c.bf16 %v28_v2, %v27_v1  ;;  %v30_v6 = vld [vmem:[%s2136_s2 + $0x18] sm:$0xff]  ;;  %v31_v8 = vld [vmem:[%s2136_s2 + $0x20] sm:$0xff]  ;;  %v32_v9 = vld [vmem:[%s2136_s2 + $0x28] sm:$0xff] }
   0x3   :  { %v1758_v7 = vpack.c.bf16 %v30_v6, %v29_v3  ;;  %v25_v10 = vld [vmem:[%s2137_s1] sm:$0xff]  ;;  %v26_v11 = vld [vmem:[%s2137_s1 + $0x8] sm:$0xff]  ;;  %v1778_v14 = vpack.c.bf16 %v32_v9, %v31_v8  ;;  %v33_v15 = vld [vmem:[%s2136_s2 + $0x30] sm:$0xff] }
   0x4   :  { %1472 = vmatpush3.bf16.msra.mxu0 %v1752_v5  ;;  %v1466_v12 = vpack.c.bf16 %v26_v11, %v25_v10  ;;  %v43_v13 = vld [vmem:[%s2138_s0] sm:$0xff]  ;;  %v34_v16 = vld [vmem:[%s2136_s2 + $0x38] sm:$0xff]  ;;  %v44_v17 = vld [vmem:[%s2138_s0 + $0x8] sm:$0xff] }
   0x5   :  { %1473 = vmatprep.subr.bf16.mxu0 %v1697_v0  ;;  %1130 = vmatprep.mubr.msk.f32.mxu1 %vm58_vm1, %v43_v13  ;;  %v1792_v18 = vpack.c.bf16 %v34_v16, %v33_v15  ;;  %v35_v19 = vld [vmem:[%s2136_s2 + $0x40] sm:$0xff]  ;;  %v36_v20 = vld [vmem:[%s2136_s2 + $0x48] sm:$0xff]  ;;  %v37_v22 = vld [vmem:[%s2136_s2 + $0x50] sm:$0xff] }
   0x6   :  { %1467 = vmatprep.subr.bf16.mxu1 %v1466_v12  ;;  %v1805_v21 = vpack.c.bf16 %v36_v20, %v35_v19  ;;  %v38_v23 = vld [vmem:[%s2136_s2 + $0x58] sm:$0xff]  ;;  %v39_v25 = vld [vmem:[%s2136_s2 + $0x60] sm:$0xff]  ;;  %v40_v26 = vld [vmem:[%s2136_s2 + $0x68] sm:$0xff] }
   0x7   :  { %1469 = vmatpush3.bf16.msra.mxu1 %v1466_v12  ;;  %v1817_v24 = vpack.c.bf16 %v38_v23, %v37_v22  ;;  %v1829_v27 = vpack.c.bf16 %v40_v26, %v39_v25  ;;  %v41_v28 = vld [vmem:[%s2136_s2 + $0x70] sm:$0xff]  ;;  %v42_v29 = vld [vmem:[%s2136_s2 + $0x78] sm:$0xff]  ;;  %v47_v33 = vld [vmem:[%s2138_s0 + $0x20] sm:$0xff] }
   0x8   :  { %1475 = vmatpush3.bf16.msra.mxu0 %v1758_v7  ;;  %1518 = vmatprep.subr.bf16.mxu1 %v1697_v0  ;;  %v1841_v30 = vpack.c.bf16 %v42_v29, %v41_v28  ;;  %v45_v31 = vld [vmem:[%s2138_s0 + $0x10] sm:$0xff]  ;;  %v46_v32 = vld [vmem:[%s2138_s0 + $0x18] sm:$0xff]  ;;  %v48_v34 = vld [vmem:[%s2138_s0 + $0x28] sm:$0xff] }
   0x9   :  { %1476 = vmatprep.subr.bf16.mxu0 %v1697_v0  ;;  %v49_v35 = vld [vmem:[%s2138_s0 + $0x30] sm:$0xff]  ;;  %v50_v36 = vld [vmem:[%s2138_s0 + $0x38] sm:$0xff]  ;;  %v1902_v39 = vld [vmem:[%s2139_s3] ss:$0 sm:$0xff] }
   0xa   :  { %1131 = vmatmul.mubr.msk.f32.vlgmr.msra.gmra.mrb[0].mxu1 %vm58_vm1, %v44_v17  ;;  %v790_v13 = vld [vmem:[%s2141_s4 + $0x18] sm:$0xff]  ;;  %v792_v19 = vld [vmem:[%s2141_s4 + $0x28] sm:$0xff] }
   0xb   :  { %1520 = vmatpush3.bf16.msra.mxu1 %v1752_v5  ;;  %1133 = vmatprep.mubr.msk.f32.mxu1 %vm58_vm1, %v45_v31  ;;  %v794_v22 = vld [vmem:[%s2141_s4 + $0x38] sm:$0xff]  ;;  %v796_v25 = vld [vmem:[%s2141_s4 + $0x48] sm:$0xff] }
   0xc   :  { %1478 = vmatpush3.bf16.msra.mxu0 %v1778_v14  ;;  %1521 = vmatprep.subr.bf16.mxu1 %v1697_v0  ;;  %v798_v28 = vld [vmem:[%s2141_s4 + $0x58] sm:$0xff]  ;;  %v800_v31 = vld [vmem:[%s2141_s4 + $0x68] sm:$0xff] }
   0xd   :  { %1479 = vmatprep.subr.bf16.mxu0 %v1697_v0 }
   0xe   :  { %1134 = vmatmul.mubr.msk.f32.gmra.mrb[2].mxu1 %vm58_vm1, %v46_v32 }
   0xf   :  { %1523 = vmatpush3.bf16.msra.mxu1 %v1758_v7  ;;  %1136 = vmatprep.mubr.msk.f32.mxu1 %vm58_vm1, %v47_v33  ;;  %v801_v33 = vld [vmem:[%s2141_s4 + $0x70] sm:$0xff] }
  0x10   :  { %1481 = vmatpush3.bf16.msra.mxu0 %v1792_v18  ;;  %1524 = vmatprep.subr.bf16.mxu1 %v1697_v0 }
  0x11   :  { %1482 = vmatprep.subr.bf16.mxu0 %v1697_v0 }
  0x12   :  { %1137 = vmatmul.mubr.msk.f32.gmra.mrb[4].mxu1 %vm58_vm1, %v48_v34  ;;  %v802_v34 = vld [vmem:[%s2141_s4 + $0x78] sm:$0xff] }
  0x13   :  { %1526 = vmatpush3.bf16.msra.mxu1 %v1778_v14  ;;  %1139 = vmatprep.mubr.msk.f32.mxu1 %vm58_vm1, %v49_v35  ;;  %v1690_v35 = vpack.c.bf16 %v802_v34, %v801_v33 }
  0x14   :  { %1484 = vmatpush3.bf16.msra.mxu0 %v1805_v21  ;;  %1527 = vmatprep.subr.bf16.mxu1 %v1697_v0 }
  0x15   :  { %1485 = vmatprep.subr.bf16.mxu0 %v1697_v0 }
  0x16   :  { %1140 = vmatmul.mubr.msk.f32.gmra.mrb[6].mxu1 %vm58_vm1, %v50_v36 }
  0x17   :  { %1529 = vmatpush3.bf16.msra.mxu1 %v1792_v18  ;;  %1244 = vmatprep.mubr.msk.f32.mxu1 %vm1698_vm0, %v1699_v4 }
  0x18   :  { %1487 = vmatpush3.bf16.msra.mxu0 %v1817_v24  ;;  %1530 = vmatprep.subr.bf16.mxu1 %v1697_v0 }
  0x19   :  { %1488 = vmatprep.subr.bf16.mxu0 %v1697_v0 }
  0x1b   :  { %1532 = vmatpush3.bf16.msra.mxu1 %v1805_v21 }
  0x1c   :  { %1490 = vmatpush3.bf16.msra.mxu0 %v1829_v27  ;;  %1533 = vmatprep.subr.bf16.mxu1 %v1697_v0 }
  0x1d   :  { %1491 = vmatprep.subr.bf16.mxu0 %v1697_v0 }
  0x1f   :  { %1535 = vmatpush3.bf16.msra.mxu1 %v1817_v24 }
  0x20   :  { %1493 = vmatpush3.bf16.msra.mxu0 %v1841_v30  ;;  %1536 = vmatprep.subr.bf16.mxu1 %v1697_v0 }
  0x21   :  { %1494 = vmatprep.subr.bf16.mxu0 %v1697_v0 }
  0x23   :  { %1175 = vmatmul.mubr.f32.vlgmr.msra.gmra.mrb[0].mxu0 %v1699_v4  ;;  %1538 = vmatpush3.bf16.msra.mxu1 %v1829_v27 }
  0x24   :  { %1496 = vmatpush3.bf16.msra.mxu0 %v1752_v5  ;;  %1209 = vmatprep.mubr.msk.f32.mxu0 %vm1698_vm0, %v1699_v4 }
  0x25   :  { %1497 = vmatprep.subr.bf16.mxu0 %v1697_v0  ;;  %1539 = vmatprep.subr.bf16.mxu1 %v1697_v0 }
  0x27   :  { %1541 = vmatpush3.bf16.msra.mxu1 %v1841_v30 }
  0x28   :  { %1499 = vmatpush3.bf16.msra.mxu0 %v1758_v7  ;;  %1566 = vmatprep.subr.bf16.mxu1 %v1697_v0 }
  0x29   :  { %1500 = vmatprep.subr.bf16.mxu0 %v1697_v0 }
  0x2c   :  { %1502 = vmatpush3.bf16.msra.mxu0 %v1778_v14 }
  0x2d   :  { %1503 = vmatprep.subr.bf16.mxu0 %v1697_v0 }
  0x30   :  { %1505 = vmatpush3.bf16.msra.mxu0 %v1792_v18 }
  0x31   :  { %1506 = vmatprep.subr.bf16.mxu0 %v1697_v0 }
  0x34   :  { %1508 = vmatpush3.bf16.msra.mxu0 %v1805_v21 }
  0x35   :  { %1509 = vmatprep.subr.bf16.mxu0 %v1697_v0 }
  0x38   :  { %1511 = vmatpush3.bf16.msra.mxu0 %v1817_v24 }
  0x39   :  { %1512 = vmatprep.subr.bf16.mxu0 %v1697_v0 }
  0x3c   :  { %1514 = vmatpush3.bf16.msra.mxu0 %v1829_v27 }
  0x3d   :  { %1515 = vmatprep.subr.bf16.mxu0 %v1697_v0 }
  0x40   :  { %1517 = vmatpush3.bf16.msra.mxu0 %v1841_v30 }
  0x41   :  { %1542 = vmatprep.subr.bf16.mxu0 %v1697_v0 }
  0xdd   :  { %v1132_v37 = vpop.f32.mrb[0].mxu1 }
  0xde   :  { %v149_v38 = vpop.f32.mrb[1].mxu1  ;;  %v155_v51 = vadd.f32 %v1132_v37, %v1902_v39 }
  0xdf   :  { %v150_v40 = vadd.f32 %v1902_v39, %v149_v38 }
  0xe1   :  { %v1135_v45 = vpop.f32.mrb[2].mxu1 }
  0xe2   :  { %v159_v46 = vpop.f32.mrb[3].mxu1  ;;  %v165_v61 = vadd.f32 %v1135_v45, %v1902_v39 }
  0xe3   :  { %v160_v56 = vadd.f32 %v1902_v39, %v159_v46 }
  0xe5   :  { %v1930_v47 = vpop.f32.mrb[4].mxu1 }
  0xe6   :  { %v1932_v48 = vpop.f32.mrb[5].mxu1  ;;  %v175_v11 = vadd.f32 %v1930_v47, %v1902_v39 }
  0xe7   :  { %v170_v3 = vadd.f32 %v1902_v39, %v1932_v48 }
  0xe9   :  { %v1934_v49 = vpop.f32.mrb[6].mxu1 }
  0xea   :  { %v1936_v50 = vpop.f32.mrb[7].mxu1 }
  0xeb   :  { %v180_v36 = vadd.f32 %v1902_v39, %v1936_v50 }
  0xf6   :  { %v254_v41 = vpop.f32.mrb[0].mxu0 }
  0xf7   :  { %v258_v42 = vadd.f32 %v254_v41, %v150_v40  ;;  %v1176_v43 = vpop.f32.mrb[1].mxu0 }
  0xf9   :  { %v1905_v44 = vmax.f32 %v258_v42, 0.0  ;;  %v955_v42 = vld [vmem:[%s2142_s5] ss:$0 sm:$0xff] }
  0xfb   :  { %260 = vst [vmem:[%s2140_s6] sm:$0xff] %v1905_v44  ;;  %1210 = vmatmul.mubr.f32.vlgmr.msra.gmra.mrb[2].mxu0 %v1905_v44 }
  0xfc   :  { %1544 = vmatpush3.bf16.msra.mxu0 %v1752_v5  ;;  %1279 = vmatprep.mubr.msk.f32.mxu0 %vm1698_vm0, %v1699_v4 }
  0xfd   :  { %1545 = vmatprep.subr.bf16.mxu0 %v1697_v0 }
 0x100   :  { %1547 = vmatpush3.bf16.msra.mxu0 %v1758_v7 }
 0x101   :  { %1548 = vmatprep.subr.bf16.mxu0 %v1697_v0 }
 0x104   :  { %1550 = vmatpush3.bf16.msra.mxu0 %v1778_v14 }
 0x105   :  { %1551 = vmatprep.subr.bf16.mxu0 %v1697_v0 }
 0x108   :  { %1553 = vmatpush3.bf16.msra.mxu0 %v1792_v18 }
 0x109   :  { %1554 = vmatprep.subr.bf16.mxu0 %v1697_v0 }
 0x10c   :  { %1556 = vmatpush3.bf16.msra.mxu0 %v1805_v21 }
 0x10d   :  { %1557 = vmatprep.subr.bf16.mxu0 %v1697_v0 }
 0x110   :  { %1559 = vmatpush3.bf16.msra.mxu0 %v1817_v24 }
 0x111   :  { %1560 = vmatprep.subr.bf16.mxu0 %v1697_v0 }
 0x114   :  { %1562 = vmatpush3.bf16.msra.mxu0 %v1829_v27 }
 0x115   :  { %1563 = vmatprep.subr.bf16.mxu0 %v1697_v0 }
 0x118   :  { %1565 = vmatpush3.bf16.msra.mxu0 %v1841_v30 }
 0x119   :  { %1590 = vmatprep.subr.bf16.mxu0 %v1697_v0 }
 0x1ce   :  { %v327_v52 = vpop.f32.mrb[2].mxu0 }
 0x1cf   :  { %v331_v53 = vadd.f32 %v327_v52, %v155_v51  ;;  %v1211_v54 = vpop.f32.mrb[3].mxu0 }
 0x1d1   :  { %v1939_v55 = vmax.f32 %v331_v53, 0.0 }
 0x1d3   :  { %948 = vst [vmem:[%s2140_s6 + $0x8] sm:$0xff] %v1939_v55  ;;  %1245 = vmatmul.mubr.f32.vlgmr.msra.gmra.mrb[8].mxu1 %v1939_v55 }
 0x1d4   :  { %1568 = vmatpush3.bf16.msra.mxu1 %v1752_v5  ;;  %1314 = vmatprep.mubr.msk.f32.mxu1 %vm1698_vm0, %v1699_v4 }
 0x1d5   :  { %1569 = vmatprep.subr.bf16.mxu1 %v1697_v0 }
 0x1d8   :  { %1571 = vmatpush3.bf16.msra.mxu1 %v1758_v7 }
 0x1d9   :  { %1572 = vmatprep.subr.bf16.mxu1 %v1697_v0 }
 0x1dc   :  { %1574 = vmatpush3.bf16.msra.mxu1 %v1778_v14 }
 0x1dd   :  { %1575 = vmatprep.subr.bf16.mxu1 %v1697_v0 }
 0x1e0   :  { %1577 = vmatpush3.bf16.msra.mxu1 %v1792_v18 }
 0x1e1   :  { %1578 = vmatprep.subr.bf16.mxu1 %v1697_v0 }
 0x1e4   :  { %1580 = vmatpush3.bf16.msra.mxu1 %v1805_v21 }
 0x1e5   :  { %1581 = vmatprep.subr.bf16.mxu1 %v1697_v0 }
 0x1e8   :  { %1583 = vmatpush3.bf16.msra.mxu1 %v1817_v24 }
 0x1e9   :  { %1584 = vmatprep.subr.bf16.mxu1 %v1697_v0 }
 0x1ec   :  { %1586 = vmatpush3.bf16.msra.mxu1 %v1829_v27 }
 0x1ed   :  { %1587 = vmatprep.subr.bf16.mxu1 %v1697_v0 }
 0x1f0   :  { %1589 = vmatpush3.bf16.msra.mxu1 %v1841_v30 }
 0x1f1   :  { %1614 = vmatprep.subr.bf16.mxu1 %v1697_v0 }
 0x2a6   :  { %v401_v57 = vpop.f32.mrb[8].mxu1 }
 0x2a7   :  { %v405_v58 = vadd.f32 %v401_v57, %v160_v56  ;;  %v1246_v59 = vpop.f32.mrb[9].mxu1 }
 0x2a9   :  { %v1965_v60 = vmax.f32 %v405_v58, 0.0 }
 0x2ab   :  { %949 = vst [vmem:[%s2140_s6 + $0x10] sm:$0xff] %v1965_v60  ;;  %1280 = vmatmul.mubr.f32.vlgmr.msra.gmra.mrb[4].mxu0 %v1965_v60 }
 0x2ac   :  { %1592 = vmatpush3.bf16.msra.mxu0 %v1752_v5  ;;  %1349 = vmatprep.mubr.msk.f32.mxu0 %vm1698_vm0, %v1699_v4 }
 0x2ad   :  { %1593 = vmatprep.subr.bf16.mxu0 %v1697_v0 }
 0x2b0   :  { %1595 = vmatpush3.bf16.msra.mxu0 %v1758_v7 }
 0x2b1   :  { %1596 = vmatprep.subr.bf16.mxu0 %v1697_v0 }
 0x2b4   :  { %1598 = vmatpush3.bf16.msra.mxu0 %v1778_v14 }
 0x2b5   :  { %1599 = vmatprep.subr.bf16.mxu0 %v1697_v0 }
 0x2b8   :  { %1601 = vmatpush3.bf16.msra.mxu0 %v1792_v18 }
 0x2b9   :  { %1602 = vmatprep.subr.bf16.mxu0 %v1697_v0 }
 0x2bc   :  { %1604 = vmatpush3.bf16.msra.mxu0 %v1805_v21 }
 0x2bd   :  { %1605 = vmatprep.subr.bf16.mxu0 %v1697_v0 }
 0x2c0   :  { %1607 = vmatpush3.bf16.msra.mxu0 %v1817_v24 }
 0x2c1   :  { %1608 = vmatprep.subr.bf16.mxu0 %v1697_v0 }
 0x2c4   :  { %1610 = vmatpush3.bf16.msra.mxu0 %v1829_v27 }
 0x2c5   :  { %1611 = vmatprep.subr.bf16.mxu0 %v1697_v0 }
 0x2c8   :  { %1613 = vmatpush3.bf16.msra.mxu0 %v1841_v30 }
 0x2c9   :  { %1638 = vmatprep.subr.bf16.mxu0 %v1697_v0 }
 0x37e   :  { %v475_v62 = vpop.f32.mrb[4].mxu0 }
 0x37f   :  { %v479_v63 = vadd.f32 %v475_v62, %v165_v61  ;;  %v1281_v1 = vpop.f32.mrb[5].mxu0  ;;  %v185_v62 = vadd.f32 %v1934_v49, %v1902_v39 }
 0x381   :  { %v1991_v2 = vmax.f32 %v479_v63, 0.0 }
 0x383   :  { %950 = vst [vmem:[%s2140_s6 + $0x18] sm:$0xff] %v1991_v2  ;;  %1315 = vmatmul.mubr.f32.vlgmr.msra.gmra.mrb[10].mxu1 %v1991_v2 }
 0x384   :  { %1616 = vmatpush3.bf16.msra.mxu1 %v1752_v5  ;;  %1384 = vmatprep.mubr.msk.f32.mxu1 %vm1698_vm0, %v1699_v4 }
 0x385   :  { %1617 = vmatprep.subr.bf16.mxu1 %v1697_v0 }
 0x388   :  { %1619 = vmatpush3.bf16.msra.mxu1 %v1758_v7 }
 0x389   :  { %1620 = vmatprep.subr.bf16.mxu1 %v1697_v0 }
 0x38c   :  { %1622 = vmatpush3.bf16.msra.mxu1 %v1778_v14 }
 0x38d   :  { %1623 = vmatprep.subr.bf16.mxu1 %v1697_v0 }
 0x390   :  { %1625 = vmatpush3.bf16.msra.mxu1 %v1792_v18 }
 0x391   :  { %1626 = vmatprep.subr.bf16.mxu1 %v1697_v0 }
 0x394   :  { %1628 = vmatpush3.bf16.msra.mxu1 %v1805_v21 }
 0x395   :  { %1629 = vmatprep.subr.bf16.mxu1 %v1697_v0 }
 0x398   :  { %1631 = vmatpush3.bf16.msra.mxu1 %v1817_v24 }
 0x399   :  { %1632 = vmatprep.subr.bf16.mxu1 %v1697_v0 }
 0x39c   :  { %1634 = vmatpush3.bf16.msra.mxu1 %v1829_v27 }
 0x39d   :  { %1635 = vmatprep.subr.bf16.mxu1 %v1697_v0 }
 0x3a0   :  { %1637 = vmatpush3.bf16.msra.mxu1 %v1841_v30 }
 0x456   :  { %v549_v6 = vpop.f32.mrb[10].mxu1 }
 0x457   :  { %v553_v8 = vadd.f32 %v549_v6, %v170_v3  ;;  %v1316_v9 = vpop.f32.mrb[11].mxu1 }
 0x459   :  { %v2017_v10 = vmax.f32 %v553_v8, 0.0 }
 0x45b   :  { %951 = vst [vmem:[%s2140_s6 + $0x20] sm:$0xff] %v2017_v10  ;;  %1350 = vmatmul.mubr.f32.vlgmr.msra.gmra.mrb[6].mxu0 %v2017_v10 }
 0x45c   :  { %1640 = vmatpush3.bf16.msra.mxu0 %v1752_v5  ;;  %1419 = vmatprep.mubr.msk.f32.mxu0 %vm1698_vm0, %v1699_v4  ;;  %v787_v4 = vld [vmem:[%s2141_s4] sm:$0xff]  ;;  %v788_v5 = vld [vmem:[%s2141_s4 + $0x8] sm:$0xff] }
 0x45d   :  { %1641 = vmatprep.subr.bf16.mxu0 %v1697_v0 }
 0x460   :  { %1643 = vmatpush3.bf16.msra.mxu0 %v1758_v7  ;;  %v1662_v7 = vpack.c.bf16 %v788_v5, %v787_v4 }
 0x461   :  { %1644 = vmatprep.subr.bf16.mxu0 %v1697_v0 }
 0x462   :  { %1663 = vmatprep.subr.bf16.mxu1 %v1662_v7 }
 0x464   :  { %1646 = vmatpush3.bf16.msra.mxu0 %v1778_v14 }
 0x465   :  { %1647 = vmatprep.subr.bf16.mxu0 %v1697_v0 }
 0x468   :  { %1649 = vmatpush3.bf16.msra.mxu0 %v1792_v18  ;;  %v791_v18 = vld [vmem:[%s2141_s4 + $0x20] sm:$0xff] }
 0x469   :  { %1650 = vmatprep.subr.bf16.mxu0 %v1697_v0  ;;  %v1670_v20 = vpack.c.bf16 %v792_v19, %v791_v18 }
 0x46c   :  { %1652 = vmatpush3.bf16.msra.mxu0 %v1805_v21  ;;  %v793_v21 = vld [vmem:[%s2141_s4 + $0x30] sm:$0xff] }
 0x46d   :  { %1653 = vmatprep.subr.bf16.mxu0 %v1697_v0  ;;  %v1674_v23 = vpack.c.bf16 %v794_v22, %v793_v21 }
 0x470   :  { %1655 = vmatpush3.bf16.msra.mxu0 %v1817_v24  ;;  %v795_v24 = vld [vmem:[%s2141_s4 + $0x40] sm:$0xff] }
 0x471   :  { %1656 = vmatprep.subr.bf16.mxu0 %v1697_v0  ;;  %v1678_v26 = vpack.c.bf16 %v796_v25, %v795_v24 }
 0x474   :  { %1658 = vmatpush3.bf16.msra.mxu0 %v1829_v27  ;;  %v797_v27 = vld [vmem:[%s2141_s4 + $0x50] sm:$0xff] }
 0x475   :  { %1659 = vmatprep.subr.bf16.mxu0 %v1697_v0  ;;  %v789_v0 = vld [vmem:[%s2141_s4 + $0x10] sm:$0xff]  ;;  %v1682_v29 = vpack.c.bf16 %v798_v28, %v797_v27 }
 0x476   :  { %v1666_v17 = vpack.c.bf16 %v790_v13, %v789_v0 }
 0x478   :  { %1661 = vmatpush3.bf16.msra.mxu0 %v1841_v30  ;;  %v799_v30 = vld [vmem:[%s2141_s4 + $0x60] sm:$0xff] }
 0x479   :  { %v1686_v32 = vpack.c.bf16 %v800_v31, %v799_v30 }
 0x52e   :  { %v623_v12 = vpop.f32.mrb[6].mxu0 }
 0x52f   :  { %v627_v14 = vadd.f32 %v623_v12, %v175_v11  ;;  %v1351_v15 = vpop.f32.mrb[7].mxu0 }
 0x531   :  { %v628_v16 = vmax.f32 %v627_v14, 0.0 }
 0x533   :  { %952 = vst [vmem:[%s2140_s6 + $0x28] sm:$0xff] %v628_v16  ;;  %1385 = vmatmul.mubr.f32.vlgmr.msra.gmra.mrb[12].mxu1 %v628_v16 }
 0x534   :  { %1665 = vmatpush3.bf16.msra.mxu1 %v1662_v7  ;;  %1454 = vmatprep.mubr.f32.mxu1 %v1905_v44 }
 0x535   :  { %1667 = vmatprep.subr.bf16.mxu1 %v1666_v17 }
 0x538   :  { %1669 = vmatpush3.bf16.msra.mxu1 %v1666_v17 }
 0x539   :  { %1671 = vmatprep.subr.bf16.mxu1 %v1670_v20 }
 0x53c   :  { %1673 = vmatpush3.bf16.msra.mxu1 %v1670_v20 }
 0x53d   :  { %1675 = vmatprep.subr.bf16.mxu1 %v1674_v23 }
 0x540   :  { %1677 = vmatpush3.bf16.msra.mxu1 %v1674_v23 }
 0x541   :  { %1679 = vmatprep.subr.bf16.mxu1 %v1678_v26 }
 0x544   :  { %1681 = vmatpush3.bf16.msra.mxu1 %v1678_v26 }
 0x545   :  { %1683 = vmatprep.subr.bf16.mxu1 %v1682_v29 }
 0x548   :  { %1685 = vmatpush3.bf16.msra.mxu1 %v1682_v29 }
 0x549   :  { %1687 = vmatprep.subr.bf16.mxu1 %v1686_v32 }
 0x54c   :  { %1689 = vmatpush3.bf16.msra.mxu1 %v1686_v32 }
 0x54d   :  { %1691 = vmatprep.subr.bf16.mxu1 %v1690_v35 }
 0x550   :  { %1693 = vmatpush3.bf16.msra.mxu1 %v1690_v35 }
 0x553   :  { %1455 = vmatmul.mubr.f32.vlgmr.msra.gmra.mrb[14].mxu1 %v1939_v55 }
 0x554   :  { %1457 = vmatprep.mubr.f32.mxu1 %v1965_v60 }
 0x557   :  { %1458 = vmatmul.mubr.f32.gmra.mrb[16].mxu1 %v1991_v2 }
 0x558   :  { %1460 = vmatprep.mubr.f32.mxu1 %v2017_v10 }
 0x55b   :  { %1461 = vmatmul.mubr.f32.gmra.mrb[18].mxu1 %v628_v16 }
 0x606   :  { %v697_v37 = vpop.f32.mrb[12].mxu1 }
 0x607   :  { %v701_v38 = vadd.f32 %v697_v37, %v180_v36  ;;  %v1386_v40 = vpop.f32.mrb[13].mxu1 }
 0x609   :  { %v702_v41 = vmax.f32 %v701_v38, 0.0 }
 0x60b   :  { %953 = vst [vmem:[%s2140_s6 + $0x30] sm:$0xff] %v702_v41  ;;  %1420 = vmatmul.mubr.f32.vlgmr.msra.gmra.mrb[8].mxu0 %v702_v41  ;;  %1463 = vmatprep.mubr.f32.mxu1 %v702_v41 }
 0x626   :  { %v1456_v43 = vpop.f32.mrb[14].mxu1 }
 0x627   :  { %v882_v44 = vadd.f32 %v1456_v43, %v955_v42  ;;  %v876_v45 = vpop.f32.mrb[15].mxu1 }
 0x628   :  { %v877_v46 = vadd.f32 %v955_v42, %v876_v45 }
 0x629   :  { %v916_v47 = vmax.f32 %v882_v44, 0.0 }
 0x62a   :  { %v915_v48 = vmax.f32 %v877_v46, 0.0  ;;  %v1459_v50 = vpop.f32.mrb[16].mxu1 }
 0x62b   :  { %924 = vst [vmem:[%s2143_s7 + $0x8] sm:$0xff] %v916_v47  ;;  %v892_v51 = vadd.f32 %v1459_v50, %v955_v42  ;;  %v886_v52 = vpop.f32.mrb[17].mxu1 }
 0x62c   :  { %923 = vst [vmem:[%s2143_s7] sm:$0xff] %v915_v48  ;;  %v887_v53 = vadd.f32 %v955_v42, %v886_v52 }
 0x62d   :  { %v918_v54 = vmax.f32 %v892_v51, 0.0 }
 0x62e   :  { %v917_v55 = vmax.f32 %v887_v53, 0.0  ;;  %v1462_v56 = vpop.f32.mrb[18].mxu1 }
 0x62f   :  { %926 = vst [vmem:[%s2143_s7 + $0x18] sm:$0xff] %v918_v54  ;;  %v902_v57 = vadd.f32 %v1462_v56, %v955_v42  ;;  %v896_v58 = vpop.f32.mrb[19].mxu1 }
 0x630   :  { %925 = vst [vmem:[%s2143_s7 + $0x10] sm:$0xff] %v917_v55  ;;  %v897_v59 = vadd.f32 %v955_v42, %v896_v58 }
 0x631   :  { %v920_v60 = vmax.f32 %v902_v57, 0.0 }
 0x632   :  { %v919_v61 = vmax.f32 %v897_v59, 0.0 }
 0x633   :  { %928 = vst [vmem:[%s2143_s7 + $0x28] sm:$0xff] %v920_v60 }
 0x634   :  { %927 = vst [vmem:[%s2143_s7 + $0x20] sm:$0xff] %v919_v61 }
 0x6de   :  { %v771_v63 = vpop.f32.mrb[8].mxu0 }
 0x6df   :  { %v775_v1 = vadd.f32 %v771_v63, %v185_v62  ;;  %v1421_v2 = vpop.f32.mrb[9].mxu0 }
 0x6e1   :  { %v776_v3 = vmax.f32 %v775_v1, 0.0 }
 0x6e3   :  { %954 = vst [vmem:[%s2140_s6 + $0x38] sm:$0xff] %v776_v3  ;;  %1464 = vmatmul.mubr.f32.gmra.mrb[20].mxu1 %v776_v3 }
 0x7b6   :  { %v1465_v6 = vpop.f32.mrb[20].mxu1 }
 0x7b7   :  { %v912_v8 = vadd.f32 %v1465_v6, %v955_v42  ;;  %v906_v9 = vpop.f32.mrb[21].mxu1 }
 0x7b8   :  { %v907_v10 = vadd.f32 %v955_v42, %v906_v9 }
 0x7b9   :  { %v922_v4 = vmax.f32 %v912_v8, 0.0 }
 0x7ba   :  { %v921_v5 = vmax.f32 %v907_v10, 0.0 }
 0x7bb   :  { %930 = vst [vmem:[%s2143_s7 + $0x38] sm:$0xff] %v922_v4 }
 0x7bc   :  { %929 = vst [vmem:[%s2143_s7 + $0x30] sm:$0xff] %v921_v5 }

</bundles_post_ra>
